<compile_context>
chip_gen: v7x
topology: tpu7x:2x2x1
jax: 0.10.0
libtpu: 0.0.40
codegen_flags: <defaults>
</compile_context>

<pallas_src>
import functools
import math

import jax
import jax.numpy as jnp
from jax.experimental import pallas as pl
from jax.experimental.pallas import tpu as pltpu

_MIB = 1024 * 1024


def _round_up(x, m):
    return (x + m - 1) // m * m


def _hw_info():
    """Returns (lane_align, vmem_capacity_bytes).

    256-wide feature tiles for v6e/v7x (2x256x256 MXU), 128 for v5e/older
    (128x128 MXU). VMEM capacity is queried from the runtime when available.
    """
    kind = ""
    try:
        kind = jax.devices()[0].device_kind.lower()
    except Exception:
        pass
    lane_align = 256 if ("v6" in kind or "v7" in kind) else 128
    try:
        vmem_cap = int(pltpu.get_tpu_info().vmem_capacity_bytes)
    except Exception:
        vmem_cap = 64 * _MIB if "v7" in kind else 128 * _MIB
    return lane_align, vmem_cap


def _linear_kernel(x_ref, w_ref, b_ref, o_ref, acc_ref, *, compute_dtype):
    """One (batch_tile, n_tile) output block, accumulated over the K grid axis.

    x_ref : (Tb, Tk) activations in their HBM dtype; cast to compute_dtype on
            the VPU (hidden under the MXU) instead of in the wrapper.
    w_ref : (Tk, Tn) weight tile, already in compute_dtype (prepared at init).
    b_ref : (1, Tn)  f32 bias tile.
    o_ref : (Tb, Tn) output tile.
    acc_ref: (Tb, Tn) f32 scratch accumulator (resident across the K axis).
    """
    k = pl.program_id(2)

    @pl.when(k == 0)
    def _():
        acc_ref[...] = jnp.zeros_like(acc_ref)

    acc_ref[...] += jnp.dot(
        x_ref[...].astype(compute_dtype),
        w_ref[...],
        preferred_element_type=jnp.float32,
    )

    @pl.when(k == pl.num_programs(2) - 1)
    def _():
        o_ref[...] = (acc_ref[...] + b_ref[...]).astype(o_ref.dtype)


class JvpLinearPallas:
    """Pallas-backed jvp_linear.forward: y = x @ W.T + b.

    Weight/bias preparation (transpose, pad, cast) is done once here, hoisted
    out of the per-call path.
    """

    def __init__(self, weight, bias, *, compute_dtype=jnp.bfloat16,
                 out_dtype=jnp.float32, single_buffer_resident=True):
        out_size, in_size = weight.shape
        assert bias.shape == (out_size,)
        self.in_size, self.out_size = in_size, out_size
        self.compute_dtype = jax.dtypes.canonicalize_dtype(compute_dtype)
        self.out_dtype = jax.dtypes.canonicalize_dtype(out_dtype)
        self.single_buffer_resident = single_buffer_resident

        lane_align, vmem_cap = _hw_info()
        self.lane_align = lane_align
        self.vmem_cap = vmem_cap
        # ~24 MiB on v7x (64 MiB VMEM, 2 TCs), ~48 MiB on v5e/v6e (128 MiB).
        self.vmem_budget = max(16 * _MIB, vmem_cap * 3 // 8)

        # Feature-tile choices (lane-dense, MXU-width aligned).
        n_tile = min(_round_up(out_size, lane_align), 512)
        k_tile = min(_round_up(in_size, lane_align), 1024)
        max_bt = 512 if lane_align == 256 else 256

        def fits(bt, nt, kt):
            return self._footprint(bt, nt, kt) <= self.vmem_budget

        # Shrink under the VMEM budget: K first, then the batch tile, then N
        # (never the output-N first -- keeps lane-dense wide stores).
        while not fits(max_bt, n_tile, k_tile) and k_tile > lane_align:
            k_tile //= 2
        while not fits(max_bt, n_tile, k_tile) and max_bt > 128:
            max_bt //= 2
        while not fits(max_bt, n_tile, k_tile) and n_tile > lane_align:
            n_tile //= 2

        self.n_tile, self.k_tile, self.max_batch_tile = n_tile, k_tile, max_bt
        self.in_pad = _round_up(in_size, k_tile)
        self.out_pad = _round_up(out_size, n_tile)

        # One-time parameter prep (zero padding keeps the math exact: padded x
        # columns meet zero weight rows; padded output columns are sliced off).
        w_t = jnp.asarray(weight).T.astype(self.compute_dtype)
        if w_t.shape != (self.in_pad, self.out_pad):
            w_t = jnp.pad(w_t, ((0, self.in_pad - in_size),
                                (0, self.out_pad - out_size)))
        b_p = jnp.asarray(bias, jnp.float32).reshape(1, out_size)
        if b_p.shape != (1, self.out_pad):
            b_p = jnp.pad(b_p, ((0, 0), (0, self.out_pad - out_size)))
        self.w_t, self.b_p = w_t, b_p

    def _footprint(self, bt, nt, kt, x_bytes=4):
        cd = self.compute_dtype.itemsize
        od = self.out_dtype.itemsize
        return (2 * bt * kt * x_bytes      # x tile (double-buffered)
                + 2 * kt * nt * cd         # weight tile (worst case: 2 bufs)
                + 2 * nt * 4               # bias tile
                + 2 * bt * nt * od         # output tile (double-buffered)
                + bt * nt * 4)             # f32 accumulator scratch

    def __call__(self, x):
        B, in_size = x.shape
        assert in_size == self.in_size

        # Batch tile: small batches pad only to the 8-row sublane granularity.
        if B < 128:
            batch_tile = _round_up(B, 8)
        else:
            bt = 128
            if B >= 512:
                bt = 256
            if B >= 2048:
                bt = 512
            batch_tile = min(bt, self.max_batch_tile)
        B_pad = _round_up(B, batch_tile)

        n_tile, k_tile = self.n_tile, self.k_tile
        b_tiles = B_pad // batch_tile
        n_tiles = self.out_pad // n_tile
        k_tiles = self.in_pad // k_tile

        # v7x megacore: guarantee >= 2 steps on a parallel axis when possible
        # so the second TensorCore is not idle.
        if b_tiles == 1 and n_tiles == 1 and n_tile >= 2 * self.lane_align:
            n_tile //= 2
            n_tiles = self.out_pad // n_tile

        # Pad x only when actually required.
        if (B_pad, self.in_pad) != x.shape:
            x = jnp.pad(x, ((0, B_pad - B), (0, self.in_pad - in_size)))

        grid = (b_tiles, n_tiles, k_tiles)

        # Grid-constant weight/bias blocks: single-buffer (no 2x reservation).
        weight_constant = (n_tiles == 1 and k_tiles == 1)
        bias_constant = (n_tiles == 1)
        w_kwargs, b_kwargs = {}, {}
        if self.single_buffer_resident and weight_constant:
            w_kwargs["pipeline_mode"] = pl.Buffered(1)
        if self.single_buffer_resident and bias_constant:
            b_kwargs["pipeline_mode"] = pl.Buffered(1)

        footprint = self._footprint(batch_tile, n_tile, k_tile,
                                    x_bytes=x.dtype.itemsize)
        vmem_limit = int(min(self.vmem_cap * 9 // 10,
                             max(32 * _MIB, footprint + 8 * _MIB)))

        cost = pl.CostEstimate(
            flops=2 * B_pad * self.in_pad * self.out_pad,
            transcendentals=0,
            bytes_accessed=(x.size * x.dtype.itemsize
                            + self.w_t.size * self.compute_dtype.itemsize
                            + self.b_p.size * 4
                            + B_pad * self.out_pad * self.out_dtype.itemsize),
        )

        kernel = functools.partial(_linear_kernel,
                                   compute_dtype=self.compute_dtype)

        out = pl.pallas_call(
            kernel,
            out_shape=jax.ShapeDtypeStruct((B_pad, self.out_pad), self.out_dtype),
            grid_spec=pltpu.PrefetchScalarGridSpec(
                num_scalar_prefetch=0,
                grid=grid,
                in_specs=[
                    pl.BlockSpec((batch_tile, k_tile), lambda i, j, k: (i, k)),
                    pl.BlockSpec((k_tile, n_tile), lambda i, j, k: (k, j),
                                 **w_kwargs),
                    pl.BlockSpec((1, n_tile), lambda i, j, k: (0, j),
                                 **b_kwargs),
                ],
                out_specs=pl.BlockSpec((batch_tile, n_tile),
                                       lambda i, j, k: (i, j)),
                scratch_shapes=[pltpu.VMEM((batch_tile, n_tile), jnp.float32)],
            ),
            compiler_params=pltpu.CompilerParams(
                dimension_semantics=("parallel", "parallel", "arbitrary"),
                vmem_limit_bytes=vmem_limit),
            cost_estimate=cost,
        )(x, self.w_t, self.b_p)

        return out[:B, :self.out_size]


def init_linear_params(key, in_size, out_size):
    """Matches jvp_linear's init:
    kaiming_uniform_(a=sqrt(5)) -> weight ~ U(-1/sqrt(fan_in), 1/sqrt(fan_in));
    bias ~ U(-1/sqrt(fan_in), 1/sqrt(fan_in)).
    Returns weight (out, in) in PyTorch layout and bias (out,)."""
    kw, kb = jax.random.split(key)
    bound = 1.0 / math.sqrt(in_size)
    weight = jax.random.uniform(kw, (out_size, in_size), jnp.float32, -bound, bound)
    bias = jax.random.uniform(kb, (out_size,), jnp.float32, -bound, bound)
    return weight, bias


def reference_forward(x, weight, bias):
    return x @ weight.T + bias[None, :]


if __name__ == "__main__":
    key = jax.random.PRNGKey(0)

    # Case 1: small shapes consistent with jvp_linear(in_size=32, out_size=16).
    batch, in_size, out_size = 8, 32, 16
    k_x, k_layer, key = jax.random.split(key, 3)
    weight, bias = init_linear_params(k_layer, in_size, out_size)
    x = jax.random.normal(k_x, (batch, in_size), jnp.float32)

    layer = JvpLinearPallas(weight, bias)          # param prep hoisted here
    out = jax.block_until_ready(layer(x))
    ref = reference_forward(x, weight, bias)
    assert out.shape == (batch, out_size)
    # bf16 MXU operands with f32 accumulation -> loosened tolerance vs f32 ref.
    assert jnp.allclose(out, ref, atol=2e-2, rtol=2e-2), "case1 mismatch"

    # Case 2: exercises batch tiling (>1 grid step) and non-aligned features.
    batch2, in2, out2 = 192, 160, 72
    k_x2, k_layer2, key = jax.random.split(key, 3)
    weight2, bias2 = init_linear_params(k_layer2, in2, out2)
    x2 = jax.random.normal(k_x2, (batch2, in2), jnp.float32)

    layer2 = JvpLinearPallas(weight2, bias2)
    out2_v = jax.block_until_ready(layer2(x2))
    ref2 = reference_forward(x2, weight2, bias2)
    assert out2_v.shape == (batch2, out2)
    assert jnp.allclose(out2_v, ref2, atol=3e-2, rtol=3e-2), "case2 mismatch"

    print("KERNEL_OK")
</pallas_src>

<mosaic_0001>
module attributes {stable_mosaic.version = 11 : i64} {
  func.func @_linear_kernel(%arg0: i32, %arg1: i32, %arg2: i32, %arg3: memref<8x128xf32, #tpu.memory_space<vmem>>, %arg4: memref<128x128xbf16, #tpu.memory_space<vmem>>, %arg5: memref<1x128xf32, #tpu.memory_space<vmem>>, %arg6: memref<8x128xf32, #tpu.memory_space<vmem>>, %arg7: memref<8x128xf32, #tpu.memory_space<vmem>>) attributes {dimension_semantics = [#tpu.dimension_semantics<parallel>, #tpu.dimension_semantics<parallel>, #tpu.dimension_semantics<arbitrary>], iteration_bounds = array<i64: 1, 1, 1>, scalar_prefetch = 0 : i64, scratch_operands = 1 : i64, tpu.core_type = #tpu.core_type<tc>, window_params = [{transform_indices = @transform_0, window_bounds = array<i64: 8, 128>}, {pipeline_mode = #tpu.pipeline_mode<synchronous>, transform_indices = @transform_1, window_bounds = array<i64: 128, 128>}, {pipeline_mode = #tpu.pipeline_mode<synchronous>, transform_indices = @transform_2, window_bounds = array<i64: 1, 128>}, {transform_indices = @transform_3, window_bounds = array<i64: 8, 128>}]} {
    %c0_i32 = arith.constant 0 : i32
    %0 = arith.cmpi eq, %arg2, %c0_i32 : i32
    %1 = arith.extui %0 : i1 to i32
    %c0_i32_0 = arith.constant 0 : i32
    %2 = arith.cmpi ne, %1, %c0_i32_0 : i32
    scf.if %2 {
      %cst_10 = arith.constant 0.000000e+00 : f32
      %13 = vector.broadcast %cst_10 : f32 to vector<8x128xf32>
      %c0_11 = arith.constant 0 : index
      %c0_12 = arith.constant 0 : index
      %14 = vector.load %arg7[%c0_11, %c0_12] : memref<8x128xf32, #tpu.memory_space<vmem>>, vector<8x128xf32>
      tpu.vector_store %arg7[%c0_11, %c0_12], %13 {strides = array<i32>} : memref<8x128xf32, #tpu.memory_space<vmem>>, vector<8x128xf32>,
    } else {
    }
    %c0 = arith.constant 0 : index
    %c0_1 = arith.constant 0 : index
    %3 = vector.load %arg7[%c0, %c0_1] : memref<8x128xf32, #tpu.memory_space<vmem>>, vector<8x128xf32>
    %c0_2 = arith.constant 0 : index
    %c0_3 = arith.constant 0 : index
    %4 = vector.load %arg3[%c0_2, %c0_3] : memref<8x128xf32, #tpu.memory_space<vmem>>, vector<8x128xf32>
    %5 = arith.truncf %4 : vector<8x128xf32> to vector<8x128xbf16>
    %c0_4 = arith.constant 0 : index
    %c0_5 = arith.constant 0 : index
    %6 = vector.load %arg4[%c0_4, %c0_5] : memref<128x128xbf16, #tpu.memory_space<vmem>>, vector<128x128xbf16>
    %cst = arith.constant dense<0.000000e+00> : vector<8x128xf32>
    %7 = tpu.matmul %5, %6, %cst {dimension_numbers = #tpu.dot_dimension_numbers<[1], [0], [0], [1], [0, 0, 1, 1], [], []>} : vector<8x128xbf16>, vector<128x128xbf16>, vector<8x128xf32> -> vector<8x128xf32>
    %8 = arith.addf %3, %7 : vector<8x128xf32>
    %c0_6 = arith.constant 0 : index
    %c0_7 = arith.constant 0 : index
    %9 = vector.load %arg7[%c0_6, %c0_7] : memref<8x128xf32, #tpu.memory_space<vmem>>, vector<8x128xf32>
    tpu.vector_store %arg7[%c0_6, %c0_7], %8 {strides = array<i32>} : memref<8x128xf32, #tpu.memory_space<vmem>>, vector<8x128xf32>,
    %c0_i32_8 = arith.constant 0 : i32
    %10 = arith.cmpi eq, %arg2, %c0_i32_8 : i32
    %11 = arith.extui %10 : i1 to i32
    %c0_i32_9 = arith.constant 0 : i32
    %12 = arith.cmpi ne, %11, %c0_i32_9 : i32
    scf.if %12 {
      %c0_10 = arith.constant 0 : index
      %c0_11 = arith.constant 0 : index
      %13 = vector.load %arg7[%c0_10, %c0_11] : memref<8x128xf32, #tpu.memory_space<vmem>>, vector<8x128xf32>
      %c0_12 = arith.constant 0 : index
      %c0_13 = arith.constant 0 : index
      %14 = vector.load %arg5[%c0_12, %c0_13] : memref<1x128xf32, #tpu.memory_space<vmem>>, vector<1x128xf32>
      %15 = vector.broadcast %14 : vector<1x128xf32> to vector<8x128xf32>
      %16 = arith.addf %13, %15 : vector<8x128xf32>
      %c0_14 = arith.constant 0 : index
      %c0_15 = arith.constant 0 : index
      %17 = vector.load %arg6[%c0_14, %c0_15] : memref<8x128xf32, #tpu.memory_space<vmem>>, vector<8x128xf32>
      tpu.vector_store %arg6[%c0_14, %c0_15], %16 {strides = array<i32>} : memref<8x128xf32, #tpu.memory_space<vmem>>, vector<8x128xf32>,
    } else {
    }
    return
  }
  func.func @transform_0(%arg0: i32, %arg1: i32, %arg2: i32) -> (i32, i32) {
    %c0_i32 = arith.constant 0 : i32
    return %arg0, %arg2 : i32, i32
  }
  func.func @transform_1(%arg0: i32, %arg1: i32, %arg2: i32) -> (i32, i32) {
    %c0_i32 = arith.constant 0 : i32
    return %arg2, %arg1 : i32, i32
  }
  func.func @transform_2(%arg0: i32, %arg1: i32, %arg2: i32) -> (i32, i32) {
    %c0_i32 = arith.constant 0 : i32
    %c0_i32_0 = arith.constant 0 : i32
    return %c0_i32, %arg1 : i32, i32
  }
  func.func @transform_3(%arg0: i32, %arg1: i32, %arg2: i32) -> (i32, i32) {
    %c0_i32 = arith.constant 0 : i32
    return %arg0, %arg1 : i32, i32
  }
}

</mosaic_0001>

<bundles_post_ra>
// kernel: tpu_custom_call.1
= control target key start
LH: loop header
LB: loop body
LE: loop exit
PB: predicated region body
PF: predicated region fallthrough
CT: control target
= control target key end

     0   :  { %8 = vsyncpa [#allocation4], 0  ;;  %s383_s0 = inlined_call_operand.hbm [shape: f32[8,128], index: 0, kind: input, shape index: {}]   ;;  %s384_s1 = inlined_call_operand.hbm [shape: bf16[128,128], index: 1, kind: input, shape index: {}]   ;;  %s385_s2 = inlined_call_operand.vmem [shape: f32[1,128], index: 2, kind: input, shape index: {}]   ;;  %s386_s3 = inlined_call_operand.hbm [shape: f32[8,128], index: 3, kind: output, shape index: {}]  }
   0x1   :  { %9 = vsyncpa [#allocation7], 0 }
   0x2   :  { %10 = vsyncpa [#allocation5], 0  ;;  %s310_s12 = smov [#allocation3]   ;;  %s311_s14 = smov [#allocation6]  }
   0x3   :  { %s17_s13 = sshll.u32 %s310_s12, 4  ;;  %s26_s15 = sshll.u32 %s311_s14, 4  ;;  %s18_s13 = int_to_ptr.vmem [resolvable:$true] %s17_s13  ;;  %s337_s15 = int_to_ptr.vmem [resolvable:$true] %s26_s15 }
   0x4   :  { %s238_s18 = scalar_lea.hbm %s383_s0, 128 }
   0x5   :  { %p239_p0 = scmp.ne.s32.totalorder %s383_s0, %s238_s18  ;;  %p242_p1 = scmp.lt.u32.totalorder %s238_s18, %s383_s0 }
   0x7   :  { %p244_p2 = pnand %p242_p1, %p239_p0 }
   0x9   :  { %247 = shalt.err (!%p244_p2)
}
   0xa   :  { %s248_s23 = scalar_lea.vmem %s18_s13, 128  ;;  %p253_p4 = scmp.lt.s32.totalorder %s18_s13, %s18_s13 }
   0xb   :  { %p249_p3 = scmp.ne.s32.totalorder %s18_s13, %s248_s23  ;;  %p254_p5 = scmp.lt.s32.totalorder %s248_s23, %s248_s23 }
   0xd   :  { %p255_p6 = por %p254_p5, %p253_p4 }
   0xf   :  { %p256_p7 = pnand %p255_p6, %p249_p3 }
  0x11   :  { %259 = shalt.err (!%p256_p7)
}
  0x12   :  { %20 = dma.hbm_to_vmem [thread:$0]  %s383_s0, 128, %s18_s13, [#allocation4]  }
  0x13   :  { %s260_s28 = scalar_lea.hbm %s384_s1, 1024 }
  0x14   :  { %p261_p8 = scmp.ne.s32.totalorder %s384_s1, %s260_s28  ;;  %p264_p9 = scmp.lt.u32.totalorder %s260_s28, %s384_s1 }
  0x16   :  { %p266_p10 = pnand %p264_p9, %p261_p8 }
  0x18   :  { %269 = shalt.err (!%p266_p10)
}
  0x19   :  { %s270_s6 = scalar_lea.vmem %s337_s15, 1024  ;;  %p275_p12 = scmp.lt.s32.totalorder %s337_s15, %s337_s15 }
  0x1a   :  { %p271_p11 = scmp.ne.s32.totalorder %s337_s15, %s270_s6  ;;  %p276_p13 = scmp.lt.s32.totalorder %s270_s6, %s270_s6 }
  0x1c   :  { %p277_p0 = por %p276_p13, %p275_p12 }
  0x1e   :  { %p278_p1 = pnand %p277_p0, %p271_p11 }
  0x20   :  { %281 = shalt.err (!%p278_p1)
}
  0x21   :  { %s312_s0 = smov 64   ;;  %s313_s7 = smov 4  }
  0x22   :  { %32 = dma.hbm_to_vmem [thread:$0]  %s384_s1, 1024, %s337_s15, [#allocation7], %s312_s0, %s312_s0, %s313_s7  }
  0x23   :  { %304 = dma.done.wait [#allocation4], 128  }
  0x24   :  { %305 = vsyncadd [#allocation4], 4294967168 }
  0x25   :  { %306 = dma.done.wait [#allocation7], 1024  }
  0x26   :  { %307 = vsyncadd [#allocation7], 4294966272  ;;  %v314_v0 = vmov 0.0   ;;  %vm315_vm0 = vmmov 0   ;;  %v230_v1 = vld [vmem:[#allocation6] sm:$0xff]   ;;  %v231_v2 = vld [vmem:[#allocation6 + $0x8] sm:$0xff]  }
  0x27   :  { %203 = vmatprep.subr.bf16.mxu0 %v314_v0  ;;  %219 = vmatprep.mubr.msk.bf16.mxu0 %vm315_vm0, %v314_v0  ;;  %v232_v3 = vld [vmem:[#allocation6 + $0x10] sm:$0xff]   ;;  %v233_v4 = vld [vmem:[#allocation6 + $0x18] sm:$0xff]   ;;  %v234_v5 = vld [vmem:[#allocation6 + $0x20] sm:$0xff]   ;;  %s316_s11 = smov [#allocation8]  }
  0x28   :  { %204 = vmatpush3.bf16.msra.mxu0 %v230_v1  ;;  %v235_v6 = vld [vmem:[#allocation6 + $0x28] sm:$0xff]   ;;  %v236_v7 = vld [vmem:[#allocation6 + $0x30] sm:$0xff]   ;;  %v237_v8 = vld [vmem:[#allocation6 + $0x38] sm:$0xff]   ;;  %s175_s12 = sshll.u32 %s316_s11, 4  ;;  %s176_s12 = int_to_ptr.vmem [resolvable:$true] %s175_s12 }
  0x29   :  { %205 = vmatprep.subr.bf16.mxu0 %v314_v0  ;;  %v48_v9 = vld [vmem:[#allocation3] sm:$0xff]  ;;  %s282_s13 = scalar_lea.vmem %s176_s12, 128  ;;  %p287_p3 = scmp.lt.s32.totalorder %s176_s12, %s176_s12 }
  0x2a   :  { %v49_v10 = vpack.c.bf16 %v48_v9, %v48_v9  ;;  %v193_v11 = vld [vmem:[%s385_s2] ss:$0 sm:$0xff]  ;;  %p283_p2 = scmp.ne.s32.totalorder %s176_s12, %s282_s13  ;;  %p288_p4 = scmp.lt.s32.totalorder %s282_s13, %s282_s13 }
  0x2c   :  { %206 = vmatpush3.bf16.msra.mxu0 %v231_v2  ;;  %p289_p5 = por %p288_p4, %p287_p3 }
  0x2d   :  { %207 = vmatprep.subr.bf16.mxu0 %v314_v0 }
  0x2e   :  { %p290_p6 = pnand %p289_p5, %p283_p2 }
  0x30   :  { %208 = vmatpush3.bf16.msra.mxu0 %v232_v3 }
  0x31   :  { %209 = vmatprep.subr.bf16.mxu0 %v314_v0 }
  0x34   :  { %210 = vmatpush3.bf16.msra.mxu0 %v233_v4 }
  0x35   :  { %211 = vmatprep.subr.bf16.mxu0 %v314_v0 }
  0x38   :  { %212 = vmatpush3.bf16.msra.mxu0 %v234_v5 }
  0x39   :  { %213 = vmatprep.subr.bf16.mxu0 %v314_v0 }
  0x3c   :  { %214 = vmatpush3.bf16.msra.mxu0 %v235_v6 }
  0x3d   :  { %215 = vmatprep.subr.bf16.mxu0 %v314_v0 }
  0x40   :  { %216 = vmatpush3.bf16.msra.mxu0 %v236_v7 }
  0x41   :  { %217 = vmatprep.subr.bf16.mxu0 %v314_v0 }
  0x44   :  { %218 = vmatpush3.bf16.msra.mxu0 %v237_v8 }
  0x47   :  { %220 = vmatmul.mubr.bf16.vlgmr.msra.gmra.mrb[0].mxu0 %v49_v10 }
 0x11a   :  { %v148_v12 = vpop.f32.mrb[0].mxu0 }
 0x11b   :  { %v167_v13 = vadd.f32 %v193_v11, %v148_v12  ;;  %v221_v14 = vpop.f32.mrb[1].mxu0 }
 0x11c   :  { %v151_v15 = vpop.f32.mrb[2].mxu0 }
 0x11d   :  { %168 = vst [vmem:[#allocation8] sm:$0xff] %v167_v13  ;;  %v222_v16 = vpop.f32.mrb[3].mxu0 }
 0x11e   :  { %293 = shalt.err (!%p290_p6)
}
 0x11f   :  { %s294_s2 = scalar_lea.hbm %s386_s3, 128 }
 0x120   :  { %p295_p7 = scmp.ne.s32.totalorder %s386_s3, %s294_s2  ;;  %p298_p8 = scmp.lt.u32.totalorder %s294_s2, %s386_s3 }
 0x122   :  { %p300_p9 = pnand %p298_p8, %p295_p7 }
 0x124   :  { %303 = shalt.err (!%p300_p9)
}
 0x125   :  { %178 = dma.vmem_to_hbm [thread:$0]  %s176_s12, 128, %s386_s3, [#allocation5]  }
 0x126   :  { %308 = dma.done.wait [#allocation5], 128  }
 0x127   :  { %309 = vsyncadd [#allocation5], 4294967168 }
 0x128   :  { %182 = vsyncpa [#allocation4], 1 }
 0x129   :  { %183 = vsyncpa [#allocation7], 1 }
 0x12a   :  { %184 = vsyncpa [#allocation5], 1 }

</bundles_post_ra>
